<compile_context>
chip_gen: v5e
topology: v5e:2x2
jax: 0.10.0
libtpu: 0.0.40
codegen_flags: <defaults>
</compile_context>

<pallas_src>
import functools

import jax
import jax.numpy as jnp
from jax.experimental import pallas as pl
from jax.experimental.pallas import tpu as pltpu


def _qnet_kernel(x_ref, w1_ref, b1_ref, w2_ref, b2_ref, o_ref):
    # One batch tile per grid step; weight/bias blocks are identical (and hence
    # VMEM-resident) for every step.
    h = jnp.dot(x_ref[...], w1_ref[...],
                preferred_element_type=jnp.float32)       # [tb, H]  (MXU)
    h = jnp.maximum(h + b1_ref[...], 0.0)                 # bias + ReLU (VPU)
    y = jnp.dot(h, w2_ref[...],
                preferred_element_type=jnp.float32)       # [tb, OutP] lane-dense
    o_ref[...] = (y + b2_ref[...]).astype(o_ref.dtype)


def prepare_qnet_params(w1, b1, w2, b2, *, lane=128):
    """One-time layout prep (call at init, NOT per forward call).

    PyTorch layout in:  w1 [H, In], b1 [H], w2 [Out, H], b2 [Out].
    Kernel layout out:  w1_t [In, H], b1 [1, H], w2_t [H, OutP], b2 [1, OutP],
    where OutP = Out rounded up to a multiple of 128 (zero-padded columns) so
    the kernel's output store is lane-dense / unmasked.
    """
    H, In = w1.shape
    Out, H2 = w2.shape
    assert H == H2
    out_p = ((Out + lane - 1) // lane) * lane

    w1_t = jnp.asarray(w1).T.astype(jnp.float32)                     # [In, H]
    b1_2d = jnp.asarray(b1).reshape(1, H).astype(jnp.float32)        # [1, H]
    w2_t = jnp.zeros((H, out_p), jnp.float32).at[:, :Out].set(
        jnp.asarray(w2).T.astype(jnp.float32))                       # [H, OutP]
    b2_2d = jnp.zeros((1, out_p), jnp.float32).at[0, :Out].set(
        jnp.asarray(b2).astype(jnp.float32))                         # [1, OutP]
    return {"w1_t": w1_t, "b1": b1_2d, "w2_t": w2_t, "b2": b2_2d, "out": Out}


def linear_qnet_forward(x, params, *, block_b=128):
    """x: [B, In] float32; params from prepare_qnet_params(). Returns [B, Out]."""
    w1_t, b1, w2_t, b2, out = (params["w1_t"], params["b1"], params["w2_t"],
                               params["b2"], params["out"])
    B, In = x.shape
    H = w1_t.shape[1]
    out_p = w2_t.shape[1]

    # Tile the batch; if B does not divide evenly, fall back to a single
    # full-array block (full-extent blocks carry no (8,128) constraint).
    tb = block_b if (B % block_b == 0 and B >= block_b) else B
    grid = (B // tb,)

    flops = 2 * B * In * H + 2 * B * H * out_p
    bytes_accessed = 4 * (B * In + In * H + H + H * out_p + out_p + B * out_p)

    y_pad = pl.pallas_call(
        _qnet_kernel,
        out_shape=jax.ShapeDtypeStruct((B, out_p), x.dtype),
        grid=grid,
        in_specs=[
            pl.BlockSpec((tb, In), lambda i: (i, 0)),      # x: tiled over B
            pl.BlockSpec((In, H), lambda i: (0, 0)),       # weights: resident
            pl.BlockSpec((1, H), lambda i: (0, 0)),
            pl.BlockSpec((H, out_p), lambda i: (0, 0)),
            pl.BlockSpec((1, out_p), lambda i: (0, 0)),
        ],
        out_specs=pl.BlockSpec((tb, out_p), lambda i: (i, 0)),
        compiler_params=pltpu.CompilerParams(
            dimension_semantics=("parallel",)),            # megacore on v7x
        cost_estimate=pl.CostEstimate(flops=flops, transcendentals=0,
                                      bytes_accessed=bytes_accessed),
    )(x, w1_t, b1, w2_t, b2)

    # Kernel output is lane-padded; return the real Out columns (this slice
    # fuses with the pallas_call under jit).
    return y_pad[:, :out]


def _reference(x, w1, b1, w2, b2):
    h = jnp.maximum(x @ w1.T + b1, 0.0)
    return h @ w2.T + b2


if __name__ == "__main__":
    # Snake-style Q-net shapes; many rows per call so launch/DMA overhead is
    # amortized and the batch grid has work to shard across cores.
    batch, input_size, hidden_size, output_size = 256, 11, 256, 3

    key = jax.random.PRNGKey(0)
    kx, kw1, kb1, kw2, kb2 = jax.random.split(key, 5)

    x = jax.random.normal(kx, (batch, input_size), dtype=jnp.float32)
    # Deterministic synthetic parameters (PyTorch nn.Linear weight layout).
    w1 = jax.random.normal(kw1, (hidden_size, input_size), dtype=jnp.float32) * 0.1
    b1 = jax.random.normal(kb1, (hidden_size,), dtype=jnp.float32) * 0.1
    w2 = jax.random.normal(kw2, (output_size, hidden_size), dtype=jnp.float32) * 0.1
    b2 = jax.random.normal(kb2, (output_size,), dtype=jnp.float32) * 0.1

    # One-time layout prep (transpose / pad), done at "init" time.
    params = prepare_qnet_params(w1, b1, w2, b2)

    # Jit the wrapper so the pallas_call + output slice form one executable.
    fwd = jax.jit(functools.partial(linear_qnet_forward, params=params))

    out = jax.block_until_ready(fwd(x))

    ref = _reference(x, w1, b1, w2, b2)
    assert out.shape == (batch, output_size)
    assert jnp.allclose(out, ref, atol=1e-5, rtol=1e-5)

    print("KERNEL_OK")
</pallas_src>

<mosaic_0001>
module attributes {stable_mosaic.version = 11 : i64} {
  func.func @_qnet_kernel(%arg0: i32, %arg1: memref<128x11xf32, #tpu.memory_space<vmem>>, %arg2: memref<11x256xf32, #tpu.memory_space<vmem>>, %arg3: memref<1x256xf32, #tpu.memory_space<vmem>>, %arg4: memref<256x128xf32, #tpu.memory_space<vmem>>, %arg5: memref<1x128xf32, #tpu.memory_space<vmem>>, %arg6: memref<128x128xf32, #tpu.memory_space<vmem>>) attributes {dimension_semantics = [#tpu.dimension_semantics<parallel>], iteration_bounds = array<i64: 2>, scalar_prefetch = 0 : i64, scratch_operands = 0 : i64, tpu.core_type = #tpu.core_type<tc>, window_params = [{transform_indices = @transform_0, window_bounds = array<i64: 128, 11>}, {pipeline_mode = #tpu.pipeline_mode<synchronous>, transform_indices = @transform_1, window_bounds = array<i64: 11, 256>}, {pipeline_mode = #tpu.pipeline_mode<synchronous>, transform_indices = @transform_2, window_bounds = array<i64: 1, 256>}, {pipeline_mode = #tpu.pipeline_mode<synchronous>, transform_indices = @transform_3, window_bounds = array<i64: 256, 128>}, {pipeline_mode = #tpu.pipeline_mode<synchronous>, transform_indices = @transform_4, window_bounds = array<i64: 1, 128>}, {transform_indices = @transform_5, window_bounds = array<i64: 128, 128>}]} {
    %c0 = arith.constant 0 : index
    %c0_0 = arith.constant 0 : index
    %0 = vector.load %arg1[%c0, %c0_0] : memref<128x11xf32, #tpu.memory_space<vmem>>, vector<128x11xf32>
    %c0_1 = arith.constant 0 : index
    %c0_2 = arith.constant 0 : index
    %1 = vector.load %arg2[%c0_1, %c0_2] : memref<11x256xf32, #tpu.memory_space<vmem>>, vector<11x256xf32>
    %cst = arith.constant dense<0.000000e+00> : vector<128x256xf32>
    %2 = tpu.matmul %0, %1, %cst {dimension_numbers = #tpu.dot_dimension_numbers<[1], [0], [0], [1], [0, 0, 1, 1], [], []>} : vector<128x11xf32>, vector<11x256xf32>, vector<128x256xf32> -> vector<128x256xf32>
    %c0_3 = arith.constant 0 : index
    %c0_4 = arith.constant 0 : index
    %3 = vector.load %arg3[%c0_3, %c0_4] : memref<1x256xf32, #tpu.memory_space<vmem>>, vector<1x256xf32>
    %4 = vector.broadcast %3 : vector<1x256xf32> to vector<128x256xf32>
    %5 = arith.addf %2, %4 : vector<128x256xf32>
    %cst_5 = arith.constant 0.000000e+00 : f32
    %6 = vector.broadcast %cst_5 : f32 to vector<128x256xf32>
    %7 = arith.maximumf %5, %6 : vector<128x256xf32>
    %c0_6 = arith.constant 0 : index
    %c0_7 = arith.constant 0 : index
    %8 = vector.load %arg4[%c0_6, %c0_7] : memref<256x128xf32, #tpu.memory_space<vmem>>, vector<256x128xf32>
    %cst_8 = arith.constant dense<0.000000e+00> : vector<128x128xf32>
    %9 = tpu.matmul %7, %8, %cst_8 {dimension_numbers = #tpu.dot_dimension_numbers<[1], [0], [0], [1], [0, 0, 1, 1], [], []>} : vector<128x256xf32>, vector<256x128xf32>, vector<128x128xf32> -> vector<128x128xf32>
    %c0_9 = arith.constant 0 : index
    %c0_10 = arith.constant 0 : index
    %10 = vector.load %arg5[%c0_9, %c0_10] : memref<1x128xf32, #tpu.memory_space<vmem>>, vector<1x128xf32>
    %11 = vector.broadcast %10 : vector<1x128xf32> to vector<128x128xf32>
    %12 = arith.addf %9, %11 : vector<128x128xf32>
    %c0_11 = arith.constant 0 : index
    %c0_12 = arith.constant 0 : index
    %13 = vector.load %arg6[%c0_11, %c0_12] : memref<128x128xf32, #tpu.memory_space<vmem>>, vector<128x128xf32>
    tpu.vector_store %arg6[%c0_11, %c0_12], %12 {strides = array<i32>} : memref<128x128xf32, #tpu.memory_space<vmem>>, vector<128x128xf32>,
    return
  }
  func.func @transform_0(%arg0: i32) -> (i32, i32) {
    %c0_i32 = arith.constant 0 : i32
    %c0_i32_0 = arith.constant 0 : i32
    return %arg0, %c0_i32 : i32, i32
  }
  func.func @transform_1(%arg0: i32) -> (i32, i32) {
    %c0_i32 = arith.constant 0 : i32
    %c0_i32_0 = arith.constant 0 : i32
    %c0_i32_1 = arith.constant 0 : i32
    return %c0_i32, %c0_i32_0 : i32, i32
  }
  func.func @transform_2(%arg0: i32) -> (i32, i32) {
    %c0_i32 = arith.constant 0 : i32
    %c0_i32_0 = arith.constant 0 : i32
    %c0_i32_1 = arith.constant 0 : i32
    return %c0_i32, %c0_i32_0 : i32, i32
  }
  func.func @transform_3(%arg0: i32) -> (i32, i32) {
    %c0_i32 = arith.constant 0 : i32
    %c0_i32_0 = arith.constant 0 : i32
    %c0_i32_1 = arith.constant 0 : i32
    return %c0_i32, %c0_i32_0 : i32, i32
  }
  func.func @transform_4(%arg0: i32) -> (i32, i32) {
    %c0_i32 = arith.constant 0 : i32
    %c0_i32_0 = arith.constant 0 : i32
    %c0_i32_1 = arith.constant 0 : i32
    return %c0_i32, %c0_i32_0 : i32, i32
  }
  func.func @transform_5(%arg0: i32) -> (i32, i32) {
    %c0_i32 = arith.constant 0 : i32
    %c0_i32_0 = arith.constant 0 : i32
    return %arg0, %c0_i32 : i32, i32
  }
}

</mosaic_0001>

<bundles_post_ra>
// kernel: linear_qnet_forward.1
= control target key start
LH: loop header
LB: loop body
LE: loop exit
PB: predicated region body
PF: predicated region fallthrough
CT: control target
= control target key end

     0   :  { %s834_s18 = smov 0   ;;  %s1094_s0 = inlined_call_operand.vmem [shape: f32[256,11], index: 0, kind: input, shape index: {}]   ;;  %s1095_s1 = inlined_call_operand.vmem [shape: f32[11,256], index: 1, kind: input, shape index: {}]   ;;  %s1096_s2 = inlined_call_operand.vmem [shape: f32[1,256], index: 2, kind: input, shape index: {}]   ;;  %s1097_s3 = inlined_call_operand.vmem [shape: f32[256,128], index: 3, kind: input, shape index: {}]   ;;  %s1098_s4 = inlined_call_operand.vmem [shape: f32[1,128], index: 4, kind: input, shape index: {}]   ;;  %s1099_s5 = inlined_call_operand.vmem [shape: f32[256,128], index: 5, kind: output, shape index: {}]  }
   0x1 LB: > { %s710_s19 = sadd.s32 4294967295, %s802_s18   ;;  %p714_p0 = scmp.ge.s32.totalorder %s802_s18, 1  ;;  %s802_s18 = sphi %s834_s18, %s15_s18  }
   0x2   : > { %p188_p1 = scmp.lt.s32.totalorder %s802_s18, 3 }
   0x4   : > { %p189_p2 = pnand %p714_p0, %p188_p1 }
   0x5   : > { %s715_s26 = sshll.u32 (!%p189_p2), %s710_s19, 4 }
   0x6   : > { %192 = sbr.rel (%p189_p2) target bundleno = 403 (0x193), region = 40  ;;  %p217_p3 = scmp.lt.s32.totalorder (!%p189_p2), %s715_s26, 31 }
   0xb   : > { %v246_v0 = vld [vmem:[%s1095_s1 + $0x10] sm:$0x7]  ;;  %vm303_vm0 = vcmask 1042432   ;;  %v244_v1 = vld [vmem:[%s1095_s1] sm:$0xff]  ;;  %v247_v2 = vld [vmem:[%s1095_s1 + $0x18] sm:$0x7] }
   0xc   : > { %719 = vmatpush.msk.msra.mxu0 %vm303_vm0, %v246_v0  ;;  %736 = vmatpush.msk.msra.mxu1 %vm303_vm0, %v247_v2  ;;  %v245_v3 = vld [vmem:[%s1095_s1 + $0x8] sm:$0xff]  ;;  %s1101_s26 = smov (!%p217_p3, %s715_s26), 31  ;;  %vm254_vm1 = vcmask 89088   ;;  %v487_v13 = vld [vmem:[%s1097_s3 + $0x78] sm:$0xff]  ;;  %v486_v14 = vld [vmem:[%s1097_s3 + $0x70] sm:$0xff] }
   0xd   : > { %s716_s29 = sshll.u32 %s1101_s26, 3  ;;  %v503_v15 = vld [vmem:[%s1097_s3 + $0xf8] sm:$0xff]  ;;  %v502_v16 = vld [vmem:[%s1097_s3 + $0xf0] sm:$0xff]  ;;  %v485_v17 = vld [vmem:[%s1097_s3 + $0x68] sm:$0xff]  ;;  %755 = vmatpush.msra.mxu2 %v487_v13 }
   0xe   : > { %325 = vmatpush.msra.mxu0 %v244_v1  ;;  %390 = vmatpush.msra.mxu1 %v245_v3  ;;  %s862_s7 = scalar_lea.vmem %s1094_s0, %s716_s29  ;;  %v484_v19 = vld [vmem:[%s1097_s3 + $0x60] sm:$0xff]  ;;  %v501_v20 = vld [vmem:[%s1097_s3 + $0xe8] sm:$0xff]  ;;  %v483_v21 = vld [vmem:[%s1097_s3 + $0x58] sm:$0xff]  ;;  %s1058_s14 = scalar_lea.vmem %s1099_s5, %s716_s29 }
   0xf   : > { %v228_v4 = vld [vmem:[%s862_s7] sm:$0xff]  ;;  %v229_v5 = vld [vmem:[%s862_s7 + $0x8] sm:$0xff]  ;;  %v230_v6 = vld [vmem:[%s862_s7 + $0x10] sm:$0xff]  ;;  %771 = vmatpush.msra.mxu3 %v503_v15  ;;  %756 = vmatpush.msra.mxu2 %v486_v14 }
  0x10   : > { %720 = vmatmul.msk.f32.vlgmr.msra.gmra.mxu0 %vm254_vm1, %v228_v4  ;;  %737 = vmatmul.msk.f32.vlgmr.msra.gmra.mxu1 %vm254_vm1, %v228_v4  ;;  %v231_v7 = vld [vmem:[%s862_s7 + $0x18] sm:$0xff]  ;;  %v232_v8 = vld [vmem:[%s862_s7 + $0x20] sm:$0xff]  ;;  %v233_v9 = vld [vmem:[%s862_s7 + $0x28] sm:$0xff] }
  0x11   : > { %v234_v10 = vld [vmem:[%s862_s7 + $0x30] sm:$0xff]  ;;  %v235_v11 = vld [vmem:[%s862_s7 + $0x38] sm:$0xff]  ;;  %v236_v12 = vld [vmem:[%s862_s7 + $0x40] sm:$0xff]  ;;  %508 = vmatpush.msrb.mxu0 %v487_v13  ;;  %573 = vmatpush.msrb.mxu1 %v503_v15 }
  0x12   : > { %772 = vmatpush.msra.mxu3 %v502_v16  ;;  %v237_v18 = vld [vmem:[%s862_s7 + $0x48] sm:$0xff]  ;;  %757 = vmatpush.msra.mxu2 %v485_v17  ;;  %v500_v22 = vld [vmem:[%s1097_s3 + $0xe0] sm:$0xff]  ;;  %v482_v23 = vld [vmem:[%s1097_s3 + $0x50] sm:$0xff] }
  0x13   : > { %509 = vmatpush.msrb.mxu0 %v486_v14  ;;  %574 = vmatpush.msrb.mxu1 %v502_v16  ;;  %v499_v24 = vld [vmem:[%s1097_s3 + $0xd8] sm:$0xff]  ;;  %v481_v25 = vld [vmem:[%s1097_s3 + $0x48] sm:$0xff]  ;;  %v498_v26 = vld [vmem:[%s1097_s3 + $0xd0] sm:$0xff] }
  0x14   : > { %758 = vmatpush.msra.mxu2 %v484_v19  ;;  %773 = vmatpush.msra.mxu3 %v501_v20  ;;  %v238_v27 = vld [vmem:[%s862_s7 + $0x50] sm:$0xff]  ;;  %v480_v28 = vld [vmem:[%s1097_s3 + $0x40] sm:$0xff]  ;;  %v497_v29 = vld [vmem:[%s1097_s3 + $0xc8] sm:$0xff] }
  0x15   : > { %510 = vmatpush.msrb.mxu0 %v485_v17  ;;  %575 = vmatpush.msrb.mxu1 %v501_v20  ;;  %v479_v30 = vld [vmem:[%s1097_s3 + $0x38] sm:$0xff]  ;;  %v496_v31 = vld [vmem:[%s1097_s3 + $0xc0] sm:$0xff]  ;;  %v478_v32 = vld [vmem:[%s1097_s3 + $0x30] sm:$0xff] }
  0x16   : > { %759 = vmatpush.msra.mxu2 %v483_v21  ;;  %774 = vmatpush.msra.mxu3 %v500_v22  ;;  %v495_v33 = vld [vmem:[%s1097_s3 + $0xb8] sm:$0xff]  ;;  %v477_v34 = vld [vmem:[%s1097_s3 + $0x28] sm:$0xff]  ;;  %v494_v35 = vld [vmem:[%s1097_s3 + $0xb0] sm:$0xff] }
  0x17   : > { %511 = vmatpush.msrb.mxu0 %v484_v19  ;;  %576 = vmatpush.msrb.mxu1 %v500_v22  ;;  %v239_v36 = vld [vmem:[%s862_s7 + $0x58] sm:$0xff]  ;;  %v476_v37 = vld [vmem:[%s1097_s3 + $0x20] sm:$0xff]  ;;  %v493_v38 = vld [vmem:[%s1097_s3 + $0xa8] sm:$0xff] }
  0x18   : > { %721 = vmatmul.msk.f32.gmra.mxu0 %vm254_vm1, %v229_v5  ;;  %738 = vmatmul.msk.f32.gmra.mxu1 %vm254_vm1, %v229_v5  ;;  %v475_v39 = vld [vmem:[%s1097_s3 + $0x18] sm:$0xff]  ;;  %v492_v40 = vld [vmem:[%s1097_s3 + $0xa0] sm:$0xff]  ;;  %v474_v41 = vld [vmem:[%s1097_s3 + $0x10] sm:$0xff] }
  0x19   : > { %512 = vmatpush.msrb.mxu0 %v483_v21  ;;  %577 = vmatpush.msrb.mxu1 %v499_v24  ;;  %v491_v42 = vld [vmem:[%s1097_s3 + $0x98] sm:$0xff]  ;;  %v240_v43 = vld [vmem:[%s862_s7 + $0x60] sm:$0xff]  ;;  %v473_v44 = vld [vmem:[%s1097_s3 + $0x8] sm:$0xff] }
  0x1a   : > { %760 = vmatpush.msra.mxu2 %v482_v23  ;;  %775 = vmatpush.msra.mxu3 %v499_v24  ;;  %v490_v45 = vld [vmem:[%s1097_s3 + $0x90] sm:$0xff]  ;;  %v472_v46 = vld [vmem:[%s1097_s3] sm:$0xff]  ;;  %v489_v47 = vld [vmem:[%s1097_s3 + $0x88] sm:$0xff] }
  0x1b   : > { %513 = vmatpush.msrb.mxu0 %v482_v23  ;;  %578 = vmatpush.msrb.mxu1 %v498_v26  ;;  %v488_v48 = vld [vmem:[%s1097_s3 + $0x80] sm:$0xff]  ;;  %v241_v49 = vld [vmem:[%s862_s7 + $0x68] sm:$0xff]  ;;  %v242_v50 = vld [vmem:[%s862_s7 + $0x70] sm:$0xff] }
  0x1c   : > { %761 = vmatpush.msra.mxu2 %v481_v25  ;;  %776 = vmatpush.msra.mxu3 %v498_v26  ;;  %v243_v51 = vld [vmem:[%s862_s7 + $0x78] sm:$0xff]  ;;  %v248_v52 = vld [vmem:[%s1096_s2] sm:$0x3] }
  0x1d   : > { %514 = vmatpush.msrb.mxu0 %v481_v25  ;;  %579 = vmatpush.msrb.mxu1 %v497_v29  ;;  %v1011_v53 = vperm.slane %v248_v52, 0  ;;  %v1013_v54 = vperm.slane %v248_v52, 1 }
  0x1e   : > { %762 = vmatpush.msra.mxu2 %v480_v28  ;;  %777 = vmatpush.msra.mxu3 %v497_v29 }
  0x1f   : > { %515 = vmatpush.msrb.mxu0 %v480_v28  ;;  %580 = vmatpush.msrb.mxu1 %v496_v31 }
  0x20   : > { %722 = vmatmul.msk.f32.gmra.mxu0 %vm254_vm1, %v230_v6  ;;  %739 = vmatmul.msk.f32.gmra.mxu1 %vm254_vm1, %v230_v6 }
  0x21   : > { %516 = vmatpush.msrb.mxu0 %v479_v30  ;;  %581 = vmatpush.msrb.mxu1 %v495_v33 }
  0x22   : > { %763 = vmatpush.msra.mxu2 %v479_v30  ;;  %778 = vmatpush.msra.mxu3 %v496_v31 }
  0x23   : > { %517 = vmatpush.msrb.mxu0 %v478_v32  ;;  %582 = vmatpush.msrb.mxu1 %v494_v35 }
  0x24   : > { %764 = vmatpush.msra.mxu2 %v478_v32  ;;  %779 = vmatpush.msra.mxu3 %v495_v33 }
  0x25   : > { %518 = vmatpush.msrb.mxu0 %v477_v34  ;;  %583 = vmatpush.msrb.mxu1 %v493_v38 }
  0x26   : > { %765 = vmatpush.msra.mxu2 %v477_v34  ;;  %780 = vmatpush.msra.mxu3 %v494_v35 }
  0x27   : > { %519 = vmatpush.msrb.mxu0 %v476_v37  ;;  %584 = vmatpush.msrb.mxu1 %v492_v40 }
  0x28   : > { %723 = vmatmul.msk.f32.gmra.mxu0 %vm254_vm1, %v231_v7  ;;  %740 = vmatmul.msk.f32.gmra.mxu1 %vm254_vm1, %v231_v7 }
  0x29   : > { %520 = vmatpush.msrb.mxu0 %v475_v39  ;;  %585 = vmatpush.msrb.mxu1 %v491_v42 }
  0x2a   : > { %766 = vmatpush.msra.mxu2 %v476_v37  ;;  %781 = vmatpush.msra.mxu3 %v493_v38 }
  0x2b   : > { %521 = vmatpush.msrb.mxu0 %v474_v41  ;;  %586 = vmatpush.msrb.mxu1 %v490_v45 }
  0x2c   : > { %767 = vmatpush.msra.mxu2 %v475_v39  ;;  %782 = vmatpush.msra.mxu3 %v492_v40 }
  0x2d   : > { %522 = vmatpush.msrb.mxu0 %v473_v44  ;;  %587 = vmatpush.msrb.mxu1 %v489_v47 }
  0x2e   : > { %768 = vmatpush.msra.mxu2 %v474_v41  ;;  %783 = vmatpush.msra.mxu3 %v491_v42 }
  0x2f   : > { %523 = vmatpush.msrb.mxu0 %v472_v46  ;;  %588 = vmatpush.msrb.mxu1 %v488_v48 }
  0x30   : > { %724 = vmatmul.msk.f32.gmra.mxu0 %vm254_vm1, %v232_v8  ;;  %741 = vmatmul.msk.f32.gmra.mxu1 %vm254_vm1, %v232_v8 }
  0x31   : > { %769 = vmatpush.msra.mxu2 %v473_v44  ;;  %784 = vmatpush.msra.mxu3 %v490_v45 }
  0x33   : > { %770 = vmatpush.msra.mxu2 %v472_v46  ;;  %785 = vmatpush.msra.mxu3 %v489_v47 }
  0x35   : > { %786 = vmatpush.msra.mxu3 %v488_v48 }
  0x38   : > { %725 = vmatmul.msk.f32.gmra.mxu0 %vm254_vm1, %v233_v9  ;;  %742 = vmatmul.msk.f32.gmra.mxu1 %vm254_vm1, %v233_v9 }
  0x40   : > { %726 = vmatmul.msk.f32.gmra.mxu0 %vm254_vm1, %v234_v10  ;;  %743 = vmatmul.msk.f32.gmra.mxu1 %vm254_vm1, %v234_v10 }
  0x48   : > { %727 = vmatmul.msk.f32.gmra.mxu0 %vm254_vm1, %v235_v11  ;;  %744 = vmatmul.msk.f32.gmra.mxu1 %vm254_vm1, %v235_v11 }
  0x50   : > { %728 = vmatmul.msk.f32.gmra.mxu0 %vm254_vm1, %v236_v12  ;;  %745 = vmatmul.msk.f32.gmra.mxu1 %vm254_vm1, %v236_v12 }
  0x58   : > { %729 = vmatmul.msk.f32.gmra.mxu0 %vm254_vm1, %v237_v18  ;;  %746 = vmatmul.msk.f32.gmra.mxu1 %vm254_vm1, %v237_v18 }
  0x60   : > { %730 = vmatmul.msk.f32.gmra.mxu0 %vm254_vm1, %v238_v27  ;;  %747 = vmatmul.msk.f32.gmra.mxu1 %vm254_vm1, %v238_v27 }
  0x68   : > { %731 = vmatmul.msk.f32.gmra.mxu0 %vm254_vm1, %v239_v36  ;;  %748 = vmatmul.msk.f32.gmra.mxu1 %vm254_vm1, %v239_v36 }
  0x70   : > { %732 = vmatmul.msk.f32.gmra.mxu0 %vm254_vm1, %v240_v43  ;;  %749 = vmatmul.msk.f32.gmra.mxu1 %vm254_vm1, %v240_v43 }
  0x78   : > { %733 = vmatmul.msk.f32.gmra.mxu0 %vm254_vm1, %v241_v49  ;;  %750 = vmatmul.msk.f32.gmra.mxu1 %vm254_vm1, %v241_v49 }
  0x80   : > { %734 = vmatmul.msk.f32.gmra.mxu0 %vm254_vm1, %v242_v50  ;;  %751 = vmatmul.msk.f32.gmra.mxu1 %vm254_vm1, %v242_v50 }
  0x88   : > { %735 = vmatmul.msk.f32.gmra.mxu0 %vm254_vm1, %v243_v51  ;;  %752 = vmatmul.msk.f32.gmra.mxu1 %vm254_vm1, %v243_v51 }
  0x8d   : > { %v327_v55 = vpop.f32.mrf.mxu0  ;;  %v392_v56 = vpop.f32.mrf.mxu1 }
  0x8e   : > { %v328_v57 = vadd.f32 %v327_v55, %v1011_v53  ;;  %v393_v58 = vadd.f32 %v392_v56, %v1013_v54 }
  0x90   : > { %v440_v59 = vmax.f32 %v328_v57, 0.0  ;;  %v441_v60 = vmax.f32 %v393_v58, 0.0 }
  0x92   : > { %524 = vmatmul.f32.vlgmr.msrb.gmra.mxu0 %v440_v59  ;;  %589 = vmatmul.f32.vlgmr.msrb.gmra.mxu1 %v441_v60 }
  0x95   : > { %v330_v61 = vpop.f32.mrf.mxu0  ;;  %v395_v62 = vpop.f32.mrf.mxu1 }
  0x96   : > { %v331_v63 = vadd.f32 %v330_v61, %v1011_v53  ;;  %v396_v0 = vadd.f32 %v395_v62, %v1013_v54 }
  0x98   : > { %v442_v1 = vmax.f32 %v331_v63, 0.0  ;;  %v443_v2 = vmax.f32 %v396_v0, 0.0 }
  0x9a   : > { %527 = vmatmul.f32.vlgmr.msra.gmra.mxu2 %v442_v1  ;;  %592 = vmatmul.f32.vlgmr.msra.gmra.mxu3 %v443_v2 }
  0x9d   : > { %v333_v3 = vpop.f32.mrf.mxu0  ;;  %v398_v4 = vpop.f32.mrf.mxu1 }
  0x9e   : > { %v334_v5 = vadd.f32 %v333_v3, %v1011_v53  ;;  %v399_v6 = vadd.f32 %v398_v4, %v1013_v54 }
  0xa0   : > { %v444_v7 = vmax.f32 %v334_v5, 0.0  ;;  %v445_v8 = vmax.f32 %v399_v6, 0.0 }
  0xa2   : > { %530 = vmatmul.f32.gmra.mxu2 %v444_v7  ;;  %595 = vmatmul.f32.gmra.mxu3 %v445_v8 }
  0xa5   : > { %v336_v9 = vpop.f32.mrf.mxu0  ;;  %v401_v10 = vpop.f32.mrf.mxu1 }
  0xa6   : > { %v337_v11 = vadd.f32 %v336_v9, %v1011_v53  ;;  %v402_v12 = vadd.f32 %v401_v10, %v1013_v54 }
  0xa8   : > { %v446_v13 = vmax.f32 %v337_v11, 0.0  ;;  %v447_v14 = vmax.f32 %v402_v12, 0.0 }
  0xaa   : > { %533 = vmatmul.f32.gmra.mxu2 %v446_v13  ;;  %598 = vmatmul.f32.gmra.mxu3 %v447_v14 }
  0xad   : > { %v339_v15 = vpop.f32.mrf.mxu0  ;;  %v404_v16 = vpop.f32.mrf.mxu1 }
  0xae   : > { %v340_v17 = vadd.f32 %v339_v15, %v1011_v53  ;;  %v405_v18 = vadd.f32 %v404_v16, %v1013_v54 }
  0xb0   : > { %v448_v19 = vmax.f32 %v340_v17, 0.0  ;;  %v449_v20 = vmax.f32 %v405_v18, 0.0 }
  0xb2   : > { %536 = vmatmul.f32.gmra.mxu2 %v448_v19  ;;  %601 = vmatmul.f32.gmra.mxu3 %v449_v20 }
  0xb5   : > { %v342_v21 = vpop.f32.mrf.mxu0  ;;  %v407_v22 = vpop.f32.mrf.mxu1 }
  0xb6   : > { %v343_v23 = vadd.f32 %v342_v21, %v1011_v53  ;;  %v408_v24 = vadd.f32 %v407_v22, %v1013_v54 }
  0xb8   : > { %v450_v25 = vmax.f32 %v343_v23, 0.0  ;;  %v451_v26 = vmax.f32 %v408_v24, 0.0 }
  0xba   : > { %539 = vmatmul.f32.gmra.mxu2 %v450_v25  ;;  %604 = vmatmul.f32.gmra.mxu3 %v451_v26  ;;  %v1050_v25 = vld [vmem:[%s1098_s4] ss:$0 sm:$0xff] }
  0xbd   : > { %v345_v27 = vpop.f32.mrf.mxu0  ;;  %v410_v28 = vpop.f32.mrf.mxu1 }
  0xbe   : > { %v346_v29 = vadd.f32 %v345_v27, %v1011_v53  ;;  %v411_v30 = vadd.f32 %v410_v28, %v1013_v54 }
  0xc0   : > { %v452_v31 = vmax.f32 %v346_v29, 0.0  ;;  %v453_v32 = vmax.f32 %v411_v30, 0.0 }
  0xc2   : > { %542 = vmatmul.f32.gmra.mxu2 %v452_v31  ;;  %607 = vmatmul.f32.gmra.mxu3 %v453_v32 }
  0xc5   : > { %v348_v33 = vpop.f32.mrf.mxu0  ;;  %v413_v34 = vpop.f32.mrf.mxu1 }
  0xc6   : > { %v349_v35 = vadd.f32 %v348_v33, %v1011_v53  ;;  %v414_v36 = vadd.f32 %v413_v34, %v1013_v54 }
  0xc8   : > { %v454_v37 = vmax.f32 %v349_v35, 0.0  ;;  %v455_v38 = vmax.f32 %v414_v36, 0.0 }
  0xca   : > { %545 = vmatmul.f32.gmra.mxu2 %v454_v37  ;;  %610 = vmatmul.f32.gmra.mxu3 %v455_v38 }
  0xcd   : > { %v351_v39 = vpop.f32.mrf.mxu0  ;;  %v416_v40 = vpop.f32.mrf.mxu1 }
  0xce   : > { %v352_v41 = vadd.f32 %v351_v39, %v1011_v53  ;;  %v417_v42 = vadd.f32 %v416_v40, %v1013_v54 }
  0xd0   : > { %v456_v43 = vmax.f32 %v352_v41, 0.0  ;;  %v457_v44 = vmax.f32 %v417_v42, 0.0 }
  0xd2   : > { %548 = vmatmul.f32.gmra.mxu2 %v456_v43  ;;  %613 = vmatmul.f32.gmra.mxu3 %v457_v44 }
  0xd5   : > { %v354_v45 = vpop.f32.mrf.mxu0  ;;  %v419_v46 = vpop.f32.mrf.mxu1 }
  0xd6   : > { %v355_v47 = vadd.f32 %v354_v45, %v1011_v53  ;;  %v420_v48 = vadd.f32 %v419_v46, %v1013_v54 }
  0xd8   : > { %v458_v49 = vmax.f32 %v355_v47, 0.0  ;;  %v459_v50 = vmax.f32 %v420_v48, 0.0 }
  0xda   : > { %551 = vmatmul.f32.gmra.mxu2 %v458_v49  ;;  %616 = vmatmul.f32.gmra.mxu3 %v459_v50 }
  0xdd   : > { %v357_v51 = vpop.f32.mrf.mxu0  ;;  %v422_v52 = vpop.f32.mrf.mxu1 }
  0xde   : > { %v358_v55 = vadd.f32 %v357_v51, %v1011_v53  ;;  %v423_v56 = vadd.f32 %v422_v52, %v1013_v54 }
  0xe0   : > { %v460_v57 = vmax.f32 %v358_v55, 0.0  ;;  %v461_v58 = vmax.f32 %v423_v56, 0.0 }
  0xe2   : > { %554 = vmatmul.f32.gmra.mxu2 %v460_v57  ;;  %619 = vmatmul.f32.gmra.mxu3 %v461_v58 }
  0xe5   : > { %v360_v59 = vpop.f32.mrf.mxu0  ;;  %v425_v60 = vpop.f32.mrf.mxu1 }
  0xe6   : > { %v361_v61 = vadd.f32 %v360_v59, %v1011_v53  ;;  %v426_v62 = vadd.f32 %v425_v60, %v1013_v54 }
  0xe8   : > { %v462_v63 = vmax.f32 %v361_v61, 0.0  ;;  %v463_v0 = vmax.f32 %v426_v62, 0.0 }
  0xea   : > { %557 = vmatmul.f32.gmra.mxu2 %v462_v63  ;;  %622 = vmatmul.f32.gmra.mxu3 %v463_v0 }
  0xed   : > { %v363_v1 = vpop.f32.mrf.mxu0  ;;  %v428_v2 = vpop.f32.mrf.mxu1 }
  0xee   : > { %v364_v3 = vadd.f32 %v363_v1, %v1011_v53  ;;  %v429_v4 = vadd.f32 %v428_v2, %v1013_v54 }
  0xf0   : > { %v464_v5 = vmax.f32 %v364_v3, 0.0  ;;  %v465_v6 = vmax.f32 %v429_v4, 0.0 }
  0xf2   : > { %560 = vmatmul.f32.gmra.mxu2 %v464_v5  ;;  %625 = vmatmul.f32.gmra.mxu3 %v465_v6 }
  0xf5   : > { %v366_v7 = vpop.f32.mrf.mxu0  ;;  %v431_v8 = vpop.f32.mrf.mxu1 }
  0xf6   : > { %v367_v9 = vadd.f32 %v366_v7, %v1011_v53  ;;  %v432_v10 = vadd.f32 %v431_v8, %v1013_v54 }
  0xf8   : > { %v466_v11 = vmax.f32 %v367_v9, 0.0  ;;  %v467_v12 = vmax.f32 %v432_v10, 0.0 }
  0xfa   : > { %563 = vmatmul.f32.gmra.mxu2 %v466_v11  ;;  %628 = vmatmul.f32.gmra.mxu3 %v467_v12 }
  0xfd   : > { %v369_v13 = vpop.f32.mrf.mxu0  ;;  %v434_v14 = vpop.f32.mrf.mxu1 }
  0xfe   : > { %v370_v15 = vadd.f32 %v369_v13, %v1011_v53  ;;  %v435_v16 = vadd.f32 %v434_v14, %v1013_v54 }
 0x100   : > { %v468_v17 = vmax.f32 %v370_v15, 0.0  ;;  %v469_v18 = vmax.f32 %v435_v16, 0.0 }
 0x102   : > { %566 = vmatmul.f32.gmra.mxu2 %v468_v17  ;;  %631 = vmatmul.f32.gmra.mxu3 %v469_v18 }
 0x105   : > { %v372_v19 = vpop.f32.mrf.mxu0  ;;  %v437_v20 = vpop.f32.mrf.mxu1 }
 0x106   : > { %v373_v21 = vadd.f32 %v372_v19, %v1011_v53  ;;  %v438_v22 = vadd.f32 %v437_v20, %v1013_v54 }
 0x108   : > { %v470_v23 = vmax.f32 %v373_v21, 0.0  ;;  %v471_v24 = vmax.f32 %v438_v22, 0.0 }
 0x10a   : > { %569 = vmatmul.f32.gmra.mxu2 %v470_v23  ;;  %634 = vmatmul.f32.gmra.mxu3 %v471_v24 }
 0x10f   : > { %v525_v26 = vpop.f32.mrf.mxu0  ;;  %v590_v27 = vpop.f32.mrf.mxu1 }
 0x110   : > { %v526_v28 = vadd.f32 %v1050_v25, %v525_v26 }
 0x112   : > { %v591_v53 = vadd.f32 %v590_v27, %v526_v28 }
 0x114   : > { %638 = vst [vmem:[%s1058_s14] sm:$0xff] %v591_v53 }
 0x11d   : > { %v528_v54 = vpop.f32.mrf.mxu2  ;;  %v593_v29 = vpop.f32.mrf.mxu3 }
 0x11e   : > { %v529_v30 = vadd.f32 %v1050_v25, %v528_v54 }
 0x120   : > { %v594_v31 = vadd.f32 %v593_v29, %v529_v30 }
 0x122   : > { %639 = vst [vmem:[%s1058_s14 + $0x8] sm:$0xff] %v594_v31 }
 0x125   : > { %v531_v32 = vpop.f32.mrf.mxu2  ;;  %v596_v33 = vpop.f32.mrf.mxu3 }
 0x126   : > { %v532_v34 = vadd.f32 %v1050_v25, %v531_v32 }
 0x128   : > { %v597_v35 = vadd.f32 %v596_v33, %v532_v34 }
 0x12a   : > { %640 = vst [vmem:[%s1058_s14 + $0x10] sm:$0xff] %v597_v35 }
 0x12d   : > { %v534_v36 = vpop.f32.mrf.mxu2  ;;  %v599_v37 = vpop.f32.mrf.mxu3 }
 0x12e   : > { %v535_v38 = vadd.f32 %v1050_v25, %v534_v36 }
 0x130   : > { %v600_v39 = vadd.f32 %v599_v37, %v535_v38 }
 0x132   : > { %641 = vst [vmem:[%s1058_s14 + $0x18] sm:$0xff] %v600_v39 }
 0x135   : > { %v537_v40 = vpop.f32.mrf.mxu2  ;;  %v602_v41 = vpop.f32.mrf.mxu3 }
 0x136   : > { %v538_v42 = vadd.f32 %v1050_v25, %v537_v40 }
 0x138   : > { %v603_v43 = vadd.f32 %v602_v41, %v538_v42 }
 0x13a   : > { %642 = vst [vmem:[%s1058_s14 + $0x20] sm:$0xff] %v603_v43 }
 0x13d   : > { %v540_v44 = vpop.f32.mrf.mxu2  ;;  %v605_v45 = vpop.f32.mrf.mxu3 }
 0x13e   : > { %v541_v46 = vadd.f32 %v1050_v25, %v540_v44 }
 0x140   : > { %v606_v47 = vadd.f32 %v605_v45, %v541_v46 }
 0x142   : > { %643 = vst [vmem:[%s1058_s14 + $0x28] sm:$0xff] %v606_v47 }
 0x145   : > { %v543_v48 = vpop.f32.mrf.mxu2  ;;  %v608_v49 = vpop.f32.mrf.mxu3 }
 0x146   : > { %v544_v50 = vadd.f32 %v1050_v25, %v543_v48 }
 0x148   : > { %v609_v51 = vadd.f32 %v608_v49, %v544_v50 }
 0x14a   : > { %644 = vst [vmem:[%s1058_s14 + $0x30] sm:$0xff] %v609_v51 }
 0x14d   : > { %v546_v52 = vpop.f32.mrf.mxu2  ;;  %v611_v55 = vpop.f32.mrf.mxu3 }
 0x14e   : > { %v547_v56 = vadd.f32 %v1050_v25, %v546_v52 }
 0x150   : > { %v612_v57 = vadd.f32 %v611_v55, %v547_v56 }
 0x152   : > { %645 = vst [vmem:[%s1058_s14 + $0x38] sm:$0xff] %v612_v57 }
 0x155   : > { %v549_v58 = vpop.f32.mrf.mxu2  ;;  %v614_v59 = vpop.f32.mrf.mxu3 }
 0x156   : > { %v550_v60 = vadd.f32 %v1050_v25, %v549_v58 }
 0x158   : > { %v615_v61 = vadd.f32 %v614_v59, %v550_v60 }
 0x15a   : > { %646 = vst [vmem:[%s1058_s14 + $0x40] sm:$0xff] %v615_v61 }
 0x15d   : > { %v552_v62 = vpop.f32.mrf.mxu2  ;;  %v617_v63 = vpop.f32.mrf.mxu3 }
 0x15e   : > { %v553_v0 = vadd.f32 %v1050_v25, %v552_v62 }
 0x160   : > { %v618_v1 = vadd.f32 %v617_v63, %v553_v0 }
 0x162   : > { %647 = vst [vmem:[%s1058_s14 + $0x48] sm:$0xff] %v618_v1 }
 0x165   : > { %v555_v2 = vpop.f32.mrf.mxu2  ;;  %v620_v3 = vpop.f32.mrf.mxu3 }
 0x166   : > { %v556_v4 = vadd.f32 %v1050_v25, %v555_v2 }
 0x168   : > { %v621_v5 = vadd.f32 %v620_v3, %v556_v4 }
 0x16a   : > { %648 = vst [vmem:[%s1058_s14 + $0x50] sm:$0xff] %v621_v5 }
 0x16d   : > { %v558_v6 = vpop.f32.mrf.mxu2  ;;  %v623_v7 = vpop.f32.mrf.mxu3 }
 0x16e   : > { %v559_v8 = vadd.f32 %v1050_v25, %v558_v6 }
 0x170   : > { %v624_v9 = vadd.f32 %v623_v7, %v559_v8 }
 0x172   : > { %649 = vst [vmem:[%s1058_s14 + $0x58] sm:$0xff] %v624_v9 }
 0x175   : > { %v561_v10 = vpop.f32.mrf.mxu2  ;;  %v626_v11 = vpop.f32.mrf.mxu3 }
 0x176   : > { %v562_v12 = vadd.f32 %v1050_v25, %v561_v10 }
 0x178   : > { %v627_v13 = vadd.f32 %v626_v11, %v562_v12 }
 0x17a   : > { %650 = vst [vmem:[%s1058_s14 + $0x60] sm:$0xff] %v627_v13 }
 0x17d   : > { %v564_v14 = vpop.f32.mrf.mxu2  ;;  %v629_v15 = vpop.f32.mrf.mxu3 }
 0x17e   : > { %v565_v16 = vadd.f32 %v1050_v25, %v564_v14 }
 0x180   : > { %v630_v17 = vadd.f32 %v629_v15, %v565_v16 }
 0x182   : > { %651 = vst [vmem:[%s1058_s14 + $0x68] sm:$0xff] %v630_v17 }
 0x185   : > { %v567_v18 = vpop.f32.mrf.mxu2  ;;  %v632_v19 = vpop.f32.mrf.mxu3 }
 0x186   : > { %v568_v20 = vadd.f32 %v1050_v25, %v567_v18 }
 0x188   : > { %v633_v21 = vadd.f32 %v632_v19, %v568_v20 }
 0x18a   : > { %652 = vst [vmem:[%s1058_s14 + $0x70] sm:$0xff] %v633_v21 }
 0x18d   : > { %v570_v22 = vpop.f32.mrf.mxu2  ;;  %v635_v23 = vpop.f32.mrf.mxu3 }
 0x18e   : > { %v571_v24 = vadd.f32 %v1050_v25, %v570_v22 }
 0x190   : > { %v636_v26 = vadd.f32 %v635_v23, %v571_v24 }
 0x192   : > { %653 = vst [vmem:[%s1058_s14 + $0x78] sm:$0xff] %v636_v26 }
 0x193 PF: > { %s15_s18 = sadd.s32 1, %s802_s18  }
 0x194   : > { %p12_p4 = scmp.ge.s32.totalorder %s15_s18, 4  }
 0x196   :  { %14 = sbr.rel (!%p12_p4) target bundleno = 1 (0x1), region = 70 }

</bundles_post_ra>
